<compile_context>
chip_gen: v5e
topology: v5e:2x2
jax: 0.10.0
libtpu: 0.0.40
codegen_flags: <defaults>
</compile_context>

<pallas_src>
import functools

import jax
import jax.numpy as jnp
from jax.experimental import pallas as pl
from jax.experimental.pallas import tpu as pltpu


_LANE = 128
_MAX_TILE_COLS = 2048  # rows per grid step (lane axis); multiple of 128


def _round_up(x, m):
    return ((x + m - 1) // m) * m


def _cross_kernel(x_ref, w_ref, b_ref, o_ref, *, num_layers):
    """One row tile, transposed (lane-dense) layout.

    x_ref: (D, TC)  embed_dim on sublanes, rows on lanes
    w_ref: (L, D)   stacked Linear(input_dim, 1, bias=False) weights
    b_ref: (L, D)   stacked bias parameters
    o_ref: (D, TC)
    """
    x0 = x_ref[...].astype(jnp.float32)            # (D, TC)
    w = w_ref[...].astype(jnp.float32)             # (L, D)
    b = b_ref[...].astype(jnp.float32)             # (L, D)

    x = x0
    for i in range(num_layers):                    # static unroll; L is small
        wi = w[i][:, None]                         # (D, 1)
        # Linear_i(x): per-row dot product -> cross-sublane reduce -> (1, TC)
        xw = jnp.sum(x * wi, axis=0, keepdims=True)
        x = x0 * xw + b[i][:, None] + x            # sublane / lane broadcasts
        # DFALayer(x) is identity in the forward pass.
    o_ref[...] = x.astype(o_ref.dtype)


def dfa_cross_network_forward(x, w, b, *, max_tile_cols=_MAX_TILE_COLS):
    """x: (batch, num_fields, embed_dim); w, b: (num_layers, embed_dim)."""
    batch, num_fields, embed_dim = x.shape
    num_layers = w.shape[0]
    rows = batch * num_fields

    # Lane-dense working layout: rows on the 128-lane axis, D on sublanes.
    xt = x.reshape(rows, embed_dim).T              # (D, rows)

    tile_cols = min(max_tile_cols, _round_up(rows, _LANE))
    rows_padded = _round_up(rows, tile_cols)
    if rows_padded != rows:
        xt = jnp.pad(xt, ((0, 0), (0, rows_padded - rows)))

    itemsize = jnp.dtype(x.dtype).itemsize
    cost = pl.CostEstimate(
        flops=6 * rows * embed_dim * num_layers,
        transcendentals=0,
        bytes_accessed=2 * rows * embed_dim * itemsize
        + 2 * num_layers * embed_dim * 4,
    )

    grid = (rows_padded // tile_cols,)
    out = pl.pallas_call(
        functools.partial(_cross_kernel, num_layers=num_layers),
        out_shape=jax.ShapeDtypeStruct((embed_dim, rows_padded), x.dtype),
        grid_spec=pltpu.PrefetchScalarGridSpec(
            num_scalar_prefetch=0,
            grid=grid,
            in_specs=[
                pl.BlockSpec((embed_dim, tile_cols), lambda c: (0, c)),
                pl.BlockSpec((num_layers, embed_dim), lambda c: (0, 0)),
                pl.BlockSpec((num_layers, embed_dim), lambda c: (0, 0)),
            ],
            out_specs=pl.BlockSpec((embed_dim, tile_cols), lambda c: (0, c)),
        ),
        compiler_params=pltpu.CompilerParams(
            dimension_semantics=("parallel",)),
        cost_estimate=cost,
    )(xt, w, b)

    # Drop row padding, transpose back to (rows, D), restore original shape.
    return out[:, :rows].T.reshape(batch, num_fields, embed_dim)


def _reference(x, w, b):
    x0 = x
    out = x
    for i in range(w.shape[0]):
        xw = jnp.sum(out * w[i][None, None, :], axis=-1, keepdims=True)
        out = x0 * xw + b[i][None, None, :] + out
    return out


if __name__ == "__main__":
    batch, num_fields, embed_dim = 2, 4, 16
    num_layers = 3  # input_dim == embed_dim

    key = jax.random.PRNGKey(0)
    kx, kw, kb = jax.random.split(key, 3)

    x = jax.random.normal(kx, (batch, num_fields, embed_dim), dtype=jnp.float32)
    # Linear(input_dim, 1, bias=False) weights, deterministically initialized.
    w = jax.random.normal(kw, (num_layers, embed_dim), dtype=jnp.float32) * 0.1
    # nn.Parameter(torch.zeros(input_dim)) starts at zero; use small nonzero
    # values here so the bias path is actually exercised by the test.
    b = jax.random.normal(kb, (num_layers, embed_dim), dtype=jnp.float32) * 0.05

    out = dfa_cross_network_forward(x, w, b)
    out = jax.block_until_ready(out)

    ref = _reference(x, w, b)
    assert out.shape == (batch, num_fields, embed_dim)
    assert jnp.allclose(out, ref, atol=1e-5, rtol=1e-5), "mismatch vs reference"

    print("KERNEL_OK")
</pallas_src>

<mosaic_0001>
module attributes {stable_mosaic.version = 11 : i64} {
  func.func @_cross_kernel(%arg0: i32, %arg1: memref<16x128xf32, #tpu.memory_space<vmem>>, %arg2: memref<3x16xf32, #tpu.memory_space<vmem>>, %arg3: memref<3x16xf32, #tpu.memory_space<vmem>>, %arg4: memref<16x128xf32, #tpu.memory_space<vmem>>) attributes {dimension_semantics = [#tpu.dimension_semantics<parallel>], iteration_bounds = array<i64: 1>, scalar_prefetch = 0 : i64, scratch_operands = 0 : i64, tpu.core_type = #tpu.core_type<tc>, window_params = [{transform_indices = @transform_0, window_bounds = array<i64: 16, 128>}, {pipeline_mode = #tpu.pipeline_mode<synchronous>, transform_indices = @transform_1, window_bounds = array<i64: 3, 16>}, {pipeline_mode = #tpu.pipeline_mode<synchronous>, transform_indices = @transform_2, window_bounds = array<i64: 3, 16>}, {transform_indices = @transform_3, window_bounds = array<i64: 16, 128>}]} {
    %c0 = arith.constant 0 : index
    %c0_0 = arith.constant 0 : index
    %0 = vector.load %arg1[%c0, %c0_0] : memref<16x128xf32, #tpu.memory_space<vmem>>, vector<16x128xf32>
    %c0_1 = arith.constant 0 : index
    %c0_2 = arith.constant 0 : index
    %1 = vector.load %arg2[%c0_1, %c0_2] : memref<3x16xf32, #tpu.memory_space<vmem>>, vector<3x16xf32>
    %c0_3 = arith.constant 0 : index
    %c0_4 = arith.constant 0 : index
    %2 = vector.load %arg3[%c0_3, %c0_4] : memref<3x16xf32, #tpu.memory_space<vmem>>, vector<3x16xf32>
    %3 = vector.extract_strided_slice %1 {offsets = [0, 0], sizes = [1, 16], strides = [1, 1]} : vector<3x16xf32> to vector<1x16xf32>
    %4 = vector.shape_cast %3 : vector<1x16xf32> to vector<16xf32>
    %5 = vector.shape_cast %4 : vector<16xf32> to vector<16x1xf32>
    %6 = vector.broadcast %5 : vector<16x1xf32> to vector<16x128xf32>
    %7 = arith.mulf %0, %6 : vector<16x128xf32>
    %cst = arith.constant dense<0.000000e+00> : vector<128xf32>
    %8 = vector.multi_reduction <add>, %7, %cst [0] : vector<16x128xf32> to vector<128xf32>
    %9 = vector.shape_cast %8 : vector<128xf32> to vector<1x128xf32>
    %10 = vector.broadcast %9 : vector<1x128xf32> to vector<16x128xf32>
    %11 = arith.mulf %0, %10 : vector<16x128xf32>
    %12 = vector.extract_strided_slice %2 {offsets = [0, 0], sizes = [1, 16], strides = [1, 1]} : vector<3x16xf32> to vector<1x16xf32>
    %13 = vector.shape_cast %12 : vector<1x16xf32> to vector<16xf32>
    %14 = vector.shape_cast %13 : vector<16xf32> to vector<16x1xf32>
    %15 = vector.broadcast %14 : vector<16x1xf32> to vector<16x128xf32>
    %16 = arith.addf %11, %15 : vector<16x128xf32>
    %17 = arith.addf %16, %0 : vector<16x128xf32>
    %18 = vector.extract_strided_slice %1 {offsets = [1, 0], sizes = [1, 16], strides = [1, 1]} : vector<3x16xf32> to vector<1x16xf32>
    %19 = vector.shape_cast %18 : vector<1x16xf32> to vector<16xf32>
    %20 = vector.shape_cast %19 : vector<16xf32> to vector<16x1xf32>
    %21 = vector.broadcast %20 : vector<16x1xf32> to vector<16x128xf32>
    %22 = arith.mulf %17, %21 : vector<16x128xf32>
    %cst_5 = arith.constant dense<0.000000e+00> : vector<128xf32>
    %23 = vector.multi_reduction <add>, %22, %cst_5 [0] : vector<16x128xf32> to vector<128xf32>
    %24 = vector.shape_cast %23 : vector<128xf32> to vector<1x128xf32>
    %25 = vector.broadcast %24 : vector<1x128xf32> to vector<16x128xf32>
    %26 = arith.mulf %0, %25 : vector<16x128xf32>
    %27 = vector.extract_strided_slice %2 {offsets = [1, 0], sizes = [1, 16], strides = [1, 1]} : vector<3x16xf32> to vector<1x16xf32>
    %28 = vector.shape_cast %27 : vector<1x16xf32> to vector<16xf32>
    %29 = vector.shape_cast %28 : vector<16xf32> to vector<16x1xf32>
    %30 = vector.broadcast %29 : vector<16x1xf32> to vector<16x128xf32>
    %31 = arith.addf %26, %30 : vector<16x128xf32>
    %32 = arith.addf %31, %17 : vector<16x128xf32>
    %33 = vector.extract_strided_slice %1 {offsets = [2, 0], sizes = [1, 16], strides = [1, 1]} : vector<3x16xf32> to vector<1x16xf32>
    %34 = vector.shape_cast %33 : vector<1x16xf32> to vector<16xf32>
    %35 = vector.shape_cast %34 : vector<16xf32> to vector<16x1xf32>
    %36 = vector.broadcast %35 : vector<16x1xf32> to vector<16x128xf32>
    %37 = arith.mulf %32, %36 : vector<16x128xf32>
    %cst_6 = arith.constant dense<0.000000e+00> : vector<128xf32>
    %38 = vector.multi_reduction <add>, %37, %cst_6 [0] : vector<16x128xf32> to vector<128xf32>
    %39 = vector.shape_cast %38 : vector<128xf32> to vector<1x128xf32>
    %40 = vector.broadcast %39 : vector<1x128xf32> to vector<16x128xf32>
    %41 = arith.mulf %0, %40 : vector<16x128xf32>
    %42 = vector.extract_strided_slice %2 {offsets = [2, 0], sizes = [1, 16], strides = [1, 1]} : vector<3x16xf32> to vector<1x16xf32>
    %43 = vector.shape_cast %42 : vector<1x16xf32> to vector<16xf32>
    %44 = vector.shape_cast %43 : vector<16xf32> to vector<16x1xf32>
    %45 = vector.broadcast %44 : vector<16x1xf32> to vector<16x128xf32>
    %46 = arith.addf %41, %45 : vector<16x128xf32>
    %47 = arith.addf %46, %32 : vector<16x128xf32>
    %c0_7 = arith.constant 0 : index
    %c0_8 = arith.constant 0 : index
    %48 = vector.load %arg4[%c0_7, %c0_8] : memref<16x128xf32, #tpu.memory_space<vmem>>, vector<16x128xf32>
    tpu.vector_store %arg4[%c0_7, %c0_8], %47 {strides = array<i32>} : memref<16x128xf32, #tpu.memory_space<vmem>>, vector<16x128xf32>,
    return
  }
  func.func @transform_0(%arg0: i32) -> (i32, i32) {
    %c0_i32 = arith.constant 0 : i32
    %c0_i32_0 = arith.constant 0 : i32
    return %c0_i32, %arg0 : i32, i32
  }
  func.func @transform_1(%arg0: i32) -> (i32, i32) {
    %c0_i32 = arith.constant 0 : i32
    %c0_i32_0 = arith.constant 0 : i32
    %c0_i32_1 = arith.constant 0 : i32
    return %c0_i32, %c0_i32_0 : i32, i32
  }
  func.func @transform_2(%arg0: i32) -> (i32, i32) {
    %c0_i32 = arith.constant 0 : i32
    %c0_i32_0 = arith.constant 0 : i32
    %c0_i32_1 = arith.constant 0 : i32
    return %c0_i32, %c0_i32_0 : i32, i32
  }
  func.func @transform_3(%arg0: i32) -> (i32, i32) {
    %c0_i32 = arith.constant 0 : i32
    %c0_i32_0 = arith.constant 0 : i32
    return %c0_i32, %arg0 : i32, i32
  }
}

</mosaic_0001>

<bundles_post_ra>
// kernel: tpu_custom_call.1
= control target key start
LH: loop header
LB: loop body
LE: loop exit
PB: predicated region body
PF: predicated region fallthrough
CT: control target
= control target key end

     0   :  { %8 = vsyncpa [#allocation3], 0  ;;  %s370_s0 = inlined_call_operand.hbm [shape: f32[16,128], index: 0, kind: input, shape index: {}]   ;;  %s371_s1 = inlined_call_operand.hbm [shape: f32[3,16], index: 1, kind: input, shape index: {}]   ;;  %s372_s2 = inlined_call_operand.hbm [shape: f32[3,16], index: 2, kind: input, shape index: {}]   ;;  %s373_s3 = inlined_call_operand.hbm [shape: f32[16,128], index: 3, kind: output, shape index: {}]  }
   0x1   :  { %9 = vsyncpa [#allocation6], 0  ;;  %s29_s14 = sshll.u32 %s371_s1, 4  ;;  %s30_s14 = int_to_ptr.hbm [resolvable:$true] %s29_s14 }
   0x2   :  { %10 = vsyncpa [#allocation4], 0  ;;  %s326_s15 = smov [#allocation5]   ;;  %s15_s19 = sshll.u32 %s370_s0, 4  ;;  %s16_s19 = int_to_ptr.hbm [resolvable:$true] %s15_s19 }
   0x3   :  { %s31_s16 = sshll.u32 %s326_s15, 4  ;;  %s327_s20 = smov [#allocation2]   ;;  %s32_s16 = int_to_ptr.vmem [resolvable:$true] %s31_s16 }
   0x4   :  { %34 = dma.hbm_to_vmem [thread:$0]  %s30_s14, 64, %s32_s16, [#allocation6]  }
   0x5   :  { %s17_s21 = sshll.u32 %s327_s20, 4  ;;  %s328_s22 = smov 128   ;;  %s18_s21 = int_to_ptr.vmem [resolvable:$true] %s17_s21 }
   0x6   :  { %s329_s23 = smov 8   ;;  %s40_s25 = sshll.u32 %s372_s2, 4  ;;  %s41_s25 = int_to_ptr.hbm [resolvable:$true] %s40_s25 }
   0x7   :  { %23 = dma.hbm_to_vmem [thread:$0]  %s16_s19, 256, %s18_s21, [#allocation3], %s328_s22, %s328_s22, %s329_s23  }
   0x8   :  { %s330_s26 = smov [#allocation7]  }
   0x9   :  { %s42_s27 = sshll.u32 %s330_s26, 4  ;;  %s43_s27 = int_to_ptr.vmem [resolvable:$true] %s42_s27 }
   0xa   :  { %45 = dma.hbm_to_vmem [thread:$0]  %s41_s25, 64, %s43_s27, [#allocation6]  }
   0xb   :  { %320 = dma.done.wait [#allocation3], 256  }
   0xc   :  { %321 = vsyncadd [#allocation3], 4294967040 }
   0xd   :  { %322 = dma.done.wait [#allocation6], 128  }
   0xe   :  { %323 = vsyncadd [#allocation6], 4294967168  ;;  %v63_v0 = vlaneseq  ;;  %v60_v2 = vld [vmem:[#allocation5] sm:$0x7]  ;;  %v61_v3 = vld [vmem:[#allocation7] sm:$0x7] }
   0xf   :  { %v62_v4 = vperm.slane %v60_v2, 0  ;;  %v86_v5 = vperm.slane %v61_v3, 0  ;;  %v103_v6 = vperm.slane %v60_v2, 1  ;;  %v127_v8 = vperm.slane %v61_v3, 1  ;;  %v58_v12 = vld [vmem:[#allocation2] sm:$0xff]  ;;  %v59_v13 = vld [vmem:[#allocation2 + $0x8] sm:$0xff] }
  0x10   :  { %v64_v1 = vshrl.u32 %v63_v0, 7  ;;  %v144_v9 = vperm.slane %v60_v2, 2  ;;  %v168_v10 = vperm.slane %v61_v3, 2  ;;  %s331_s0 = smov [#allocation8]   ;;  %s193_s30 = sshll.u32 %s373_s3, 4  ;;  %s194_s30 = int_to_ptr.hbm [resolvable:$true] %s193_s30 }
  0x11   :  { %s191_s2 = sshll.u32 %s331_s0, 4  ;;  %s192_s2 = int_to_ptr.vmem [resolvable:$true] %s191_s2 }
  0x12   :  { %213 = vset.pattern.permute.xlu0 %v64_v1  ;;  %215 = vset.pattern.permute.xlu1 %v64_v1  ;;  %v71_v7 = vadd.s32 8, %v64_v1 }
  0x13   :  { %217 = vset.pattern.permute.xlu2 %v64_v1 }
  0x1a   :  { %67 = vperm.xlu0 %213, %v62_v4   ;;  %91 = vperm.xlu1 %215, %v86_v5  }
  0x1b   :  { %108 = vperm.xlu2 %217, %v103_v6  }
  0x22   :  { %214 = vset.pattern.permute.xlu0 %v71_v7  ;;  %216 = vset.pattern.permute.xlu1 %v71_v7 }
  0x23   :  { %218 = vset.pattern.permute.xlu2 %v71_v7 }
  0x2a   :  { %73 = vperm.xlu0 %214, %v62_v4   ;;  %97 = vperm.xlu1 %216, %v86_v5  }
  0x2b   :  { %114 = vperm.xlu2 %218, %v103_v6  }
  0x32   :  { %219 = vset.pattern.permute.xlu1 %v64_v1  ;;  %220 = vset.pattern.permute.xlu0 %v64_v1 }
  0x33   :  { %138 = vperm.xlu2 %218, %v127_v8  }
  0x3a   :  { %132 = vperm.xlu1 %219, %v127_v8   ;;  %149 = vperm.xlu0 %220, %v144_v9  }
  0x3b   :  { %222 = vset.pattern.permute.xlu2 %v64_v1 }
  0x42   :  { %221 = vset.pattern.permute.xlu1 %v71_v7  ;;  %223 = vset.pattern.permute.xlu0 %v71_v7 }
  0x43   :  { %173 = vperm.xlu2 %222, %v168_v10  }
  0x4a   :  { %155 = vperm.xlu1 %221, %v144_v9  }
  0x52   :  { %179 = vperm.xlu1 %221, %v168_v10  }
  0x75   :  { %v109_v23 = vpop.permute.xlu2 %108 }
  0x85   :  { %v115_v33 = vpop.permute.xlu2 %114 }
  0x8c   :  { %v68_v11 = vpop.permute.xlu0 %67  ;;  %v92_v21 = vpop.permute.xlu1 %91 }
  0x8d   :  { %v75_v15 = vmul.f32 %v68_v11, %v58_v12  ;;  %v139_v46 = vpop.permute.xlu2 %138 }
  0x9c   :  { %v74_v14 = vpop.permute.xlu0 %73  ;;  %v98_v28 = vpop.permute.xlu1 %97 }
  0x9d   :  { %v76_v16 = vmul.f32 %v74_v14, %v59_v13  ;;  %v174_v62 = vpop.permute.xlu2 %173 }
  0x9f   :  { %v77_v17 = vadd.f32 %v76_v16, %v75_v15 }
  0xa1   :  { %v78_v18 = vrot.slane %v77_v17, 4 }
  0xa3   :  { %v79_v19 = vadd.f32 %v78_v18, %v77_v17 }
  0xa5   :  { %v80_v20 = vrot.slane %v79_v19, 2 }
  0xa7   :  { %v81_v22 = vadd.f32 %v80_v20, %v79_v19 }
  0xa9   :  { %v82_v24 = vrot.slane %v81_v22, 1 }
  0xab   :  { %v83_v25 = vadd.f32 %v82_v24, %v81_v22 }
  0xac   :  { %v133_v41 = vpop.permute.xlu1 %132  ;;  %v150_v49 = vpop.permute.xlu0 %149 }
  0xad   :  { %v84_v26 = vmul.f32 %v83_v25, %v58_v12  ;;  %v85_v27 = vmul.f32 %v83_v25, %v59_v13 }
  0xaf   :  { %v99_v29 = vadd.f32 %v92_v21, %v84_v26  ;;  %v100_v30 = vadd.f32 %v98_v28, %v85_v27 }
  0xb1   :  { %v101_v31 = vadd.f32 %v99_v29, %v58_v12  ;;  %v102_v32 = vadd.f32 %v100_v30, %v59_v13 }
  0xb3   :  { %v116_v34 = vmul.f32 %v109_v23, %v101_v31  ;;  %v117_v35 = vmul.f32 %v115_v33, %v102_v32 }
  0xb5   :  { %v118_v36 = vadd.f32 %v117_v35, %v116_v34 }
  0xb7   :  { %v119_v37 = vrot.slane %v118_v36, 4 }
  0xb9   :  { %v120_v38 = vadd.f32 %v119_v37, %v118_v36 }
  0xbb   :  { %v121_v39 = vrot.slane %v120_v38, 2 }
  0xbc   :  { %v156_v52 = vpop.permute.xlu1 %155 }
  0xbd   :  { %v122_v40 = vadd.f32 %v121_v39, %v120_v38 }
  0xbf   :  { %v123_v42 = vrot.slane %v122_v40, 1 }
  0xc1   :  { %v124_v43 = vadd.f32 %v123_v42, %v122_v40 }
  0xc3   :  { %v126_v44 = vmul.f32 %v124_v43, %v59_v13  ;;  %v125_v45 = vmul.f32 %v124_v43, %v58_v12 }
  0xc4   :  { %v180_v1 = vpop.permute.xlu1 %179 }
  0xc5   :  { %v141_v47 = vadd.f32 %v139_v46, %v126_v44  ;;  %v140_v48 = vadd.f32 %v133_v41, %v125_v45 }
  0xc7   :  { %v143_v50 = vadd.f32 %v141_v47, %v102_v32  ;;  %v142_v51 = vadd.f32 %v140_v48, %v101_v31 }
  0xc9   :  { %v158_v53 = vmul.f32 %v156_v52, %v143_v50  ;;  %v157_v54 = vmul.f32 %v150_v49, %v142_v51 }
  0xcb   :  { %v159_v55 = vadd.f32 %v158_v53, %v157_v54 }
  0xcd   :  { %v160_v56 = vrot.slane %v159_v55, 4 }
  0xcf   :  { %v161_v57 = vadd.f32 %v160_v56, %v159_v55 }
  0xd1   :  { %v162_v58 = vrot.slane %v161_v57, 2 }
  0xd3   :  { %v163_v59 = vadd.f32 %v162_v58, %v161_v57 }
  0xd5   :  { %v164_v60 = vrot.slane %v163_v59, 1 }
  0xd7   :  { %v165_v61 = vadd.f32 %v164_v60, %v163_v59 }
  0xd9   :  { %v166_v63 = vmul.f32 %v165_v61, %v58_v12  ;;  %v167_v0 = vmul.f32 %v165_v61, %v59_v13 }
  0xdb   :  { %v181_v2 = vadd.f32 %v174_v62, %v166_v63  ;;  %v182_v3 = vadd.f32 %v180_v1, %v167_v0 }
  0xdd   :  { %v183_v4 = vadd.f32 %v181_v2, %v142_v51  ;;  %v184_v5 = vadd.f32 %v182_v3, %v143_v50 }
  0xdf   :  { %185 = vst [vmem:[#allocation8] sm:$0xff] %v183_v4 }
  0xe0   :  { %186 = vst [vmem:[#allocation8 + $0x8] sm:$0xff] %v184_v5 }
  0xe1   :  { %199 = dma.vmem_to_hbm [thread:$0]  %s192_s2, 256, %s194_s30, [#allocation4], %s328_s22, %s328_s22, %s329_s23  }
  0xe2   :  { %324 = dma.done.wait [#allocation4], 256  }
  0xe3   :  { %325 = vsyncadd [#allocation4], 4294967040 }
  0xe4   :  { %204 = vsyncpa [#allocation3], 1 }
  0xe5   :  { %205 = vsyncpa [#allocation6], 1 }
  0xe6   :  { %206 = vsyncpa [#allocation4], 1 }

</bundles_post_ra>
